<compile_context>
chip_gen: v5e
topology: v5e:2x2
jax: 0.10.0
libtpu: 0.0.40
codegen_flags: <defaults>
</compile_context>

<pallas_src>
import functools

import jax
import jax.numpy as jnp
from jax.experimental import pallas as pl
from jax.experimental.pallas import tpu as pltpu


def _patch_embed_kernel(x_ref, w_ref, b_ref, o_ref):
    # x_ref: (tm, K')  bf16 packed patches (tile of the M grid)
    # w_ref: (K', E')  bf16 (block-diagonal) projection weight, VMEM-resident
    # b_ref: (1,  E')  f32 bias, VMEM-resident
    # o_ref: (tm, E')  output tile (f32 or bf16), written exactly once
    acc = jnp.dot(x_ref[...], w_ref[...], preferred_element_type=jnp.float32)
    o_ref[...] = (acc + b_ref[...]).astype(o_ref.dtype)


def _packing_factor(M, K, E, max_weight_bytes=512 * 1024):
    """Pick q so q*E (and ideally q*K) are multiples of 128 (lane-dense).

    Gated so the kron block-diagonal bf16 weight stays a few hundred KiB at
    most (the packing multiplies weight bytes / MXU FLOPs by ~q^2).  For real
    ViT sizes (E % 128 == 0, e.g. E=768) this returns 1 and is a no-op.
    """
    if E % 128 == 0:
        return 1

    def ok(q):
        return (M % q == 0 and (q * E) % 128 == 0
                and (q * K) * (q * E) * 2 <= max_weight_bytes)

    for q in (8, 4, 2):          # prefer q making both load and store dense
        if ok(q) and (q * K) % 128 == 0:
            return q
    for q in (8, 4, 2):          # else at least make the store path dense
        if ok(q):
            return q
    return 1


@functools.partial(jax.jit, static_argnames=("patch_size", "out_dtype"))
def patch_embedding(images, weight, bias, *, patch_size, out_dtype=None):
    """images: (B, 1, H, W); weight: (E, 1, p, p); bias: (E,).

    Returns (B, N, E) with N = (H//p)*(W//p), matching the PyTorch module.
    out_dtype=None keeps the input dtype (PyTorch contract); pass
    jnp.bfloat16 when the downstream consumer is bf16 to halve HBM writeback.
    """
    B, C, H, W = images.shape
    assert C == 1, "module is defined with in_channels=1"
    p = patch_size
    E = weight.shape[0]
    gh, gw = H // p, W // p
    N = gh * gw
    M, K = B * N, p * p
    out_dtype = images.dtype if out_dtype is None else jnp.dtype(out_dtype)

    # --- patch extraction: bf16 convert + transpose fuse into ONE XLA pass --
    x = images.astype(jnp.bfloat16).reshape(B, gh, p, gw, p)
    x = jnp.transpose(x, (0, 1, 3, 2, 4))        # (B, gh, gw, p, p)
    patches = x.reshape(M, K)                    # (B*N, p*p), bf16

    # conv weight (E,1,p,p) -> (p*p, E) so patches @ w == conv output
    w_t = weight.reshape(E, K).T.astype(jnp.bfloat16)
    b_row = bias.reshape(1, E).astype(jnp.float32)

    # --- lane-density packing (metadata reshapes only, no extra HBM bytes) --
    q = _packing_factor(M, K, E)
    if q > 1:
        w_t = jnp.kron(jnp.eye(q, dtype=jnp.bfloat16), w_t)   # (qK, qE)
        b_row = jnp.tile(b_row, (1, q))                        # (1, qE)
    Mq, Kq, Eq = M // q, q * K, q * E
    x_packed = patches.reshape(Mq, Kq)           # free reshape (row-major)

    # --- tiled matmul + bias -------------------------------------------------
    # tm=2048: per-step DMA overhead (~0.35 us) amortized to <10% of the HBM
    # time per step.  Double-buffered footprint at real ViT sizes (K'=256,
    # E'=768): x ~2 MiB, out 6 MiB (bf16) / 12 MiB (f32), weight ~0.75 MiB
    # -> <= ~15 MiB, so vmem_limit_bytes=32 MiB below keeps v5e (16 MiB
    # default scoped VMEM) safe and stays inside v7x's 64 MiB physical VMEM.
    tm = min(2048, Mq)
    if tm == Mq and Mq >= 1024:
        # Would be a single grid tile: split in two (multiple of 8 rows) so
        # the "parallel" axis can shard across v7x's 2 TensorCores.
        tm = (((Mq + 1) // 2) + 7) // 8 * 8
    grid = (pl.cdiv(Mq, tm),)

    out = pl.pallas_call(
        _patch_embed_kernel,
        out_shape=jax.ShapeDtypeStruct((Mq, Eq), out_dtype),
        grid_spec=pl.GridSpec(
            grid=grid,
            in_specs=[
                pl.BlockSpec((tm, Kq), lambda i: (i, 0)),   # streamed x tiles
                pl.BlockSpec((Kq, Eq), lambda i: (0, 0)),   # weight: resident
                pl.BlockSpec((1, Eq), lambda i: (0, 0)),    # bias:   resident
            ],
            out_specs=pl.BlockSpec((tm, Eq), lambda i: (i, 0)),
        ),
        compiler_params=pltpu.CompilerParams(
            # Each output tile is written exactly once -> rows independent;
            # "parallel" lets v7x shard tiles across its 2 TensorCores.
            dimension_semantics=("parallel",),
            vmem_limit_bytes=32 * 1024 * 1024,
        ),
    )(x_packed, w_t, b_row)

    # (M/q, q*E) -> (M, E) -> (B, N, E): metadata-only reshapes, no cast.
    return out.reshape(M, E).reshape(B, N, E)


def _reference(images, weight, bias, patch_size):
    # Pure-JAX f32 reference via lax.conv_general_dilated (NCHW, OIHW).
    y = jax.lax.conv_general_dilated(
        images, weight,
        window_strides=(patch_size, patch_size),
        padding="VALID",
        dimension_numbers=("NCHW", "OIHW", "NCHW"),
    ) + bias.reshape(1, -1, 1, 1)
    B, E, gh, gw = y.shape
    return jnp.transpose(y.reshape(B, E, gh * gw), (0, 2, 1))


if __name__ == "__main__":
    key = jax.random.PRNGKey(0)
    k_img, k_w, k_b = jax.random.split(key, 3)

    B, H, W = 2, 16, 16
    patch_size = 4
    emb_dim = 32

    images = jax.random.normal(k_img, (B, 1, H, W), dtype=jnp.float32)
    # Deterministic synthetic conv parameters (shapes from nn.Conv2d(1, E, p, p)).
    weight = jax.random.normal(k_w, (emb_dim, 1, patch_size, patch_size),
                               dtype=jnp.float32) * 0.1
    bias = jax.random.normal(k_b, (emb_dim,), dtype=jnp.float32) * 0.1

    N = (H // patch_size) * (W // patch_size)
    ref = _reference(images, weight, bias, patch_size)

    # Default path: output dtype follows the input (PyTorch module contract).
    out = patch_embedding(images, weight, bias, patch_size=patch_size)
    out = jax.block_until_ready(out)
    assert out.shape == (B, N, emb_dim)
    assert out.dtype == images.dtype
    # bf16 matmul operands (f32 accumulation) -> slightly looser tolerance.
    assert jnp.allclose(out, ref, atol=5e-2, rtol=5e-2), \
        float(jnp.max(jnp.abs(out - ref)))

    # Perf path: bf16 writeback (halves output HBM traffic) for bf16 consumers.
    out_bf16 = patch_embedding(images, weight, bias, patch_size=patch_size,
                               out_dtype=jnp.bfloat16)
    out_bf16 = jax.block_until_ready(out_bf16)
    assert out_bf16.shape == (B, N, emb_dim)
    assert out_bf16.dtype == jnp.bfloat16
    assert jnp.allclose(out_bf16.astype(jnp.float32), ref, atol=1e-1, rtol=1e-1), \
        float(jnp.max(jnp.abs(out_bf16.astype(jnp.float32) - ref)))

    print("KERNEL_OK")
</pallas_src>

<mosaic_0001>
module attributes {stable_mosaic.version = 11 : i64} {
  func.func @_patch_embed_kernel(%arg0: i32, %arg1: memref<4x128xbf16, #tpu.memory_space<vmem>>, %arg2: memref<128x256xbf16, #tpu.memory_space<vmem>>, %arg3: memref<1x256xf32, #tpu.memory_space<vmem>>, %arg4: memref<4x256xf32, #tpu.memory_space<vmem>>) attributes {dimension_semantics = [#tpu.dimension_semantics<parallel>], iteration_bounds = array<i64: 1>, scalar_prefetch = 0 : i64, scratch_operands = 0 : i64, tpu.core_type = #tpu.core_type<tc>, window_params = [{transform_indices = @transform_0, window_bounds = array<i64: 4, 128>}, {pipeline_mode = #tpu.pipeline_mode<synchronous>, transform_indices = @transform_1, window_bounds = array<i64: 128, 256>}, {pipeline_mode = #tpu.pipeline_mode<synchronous>, transform_indices = @transform_2, window_bounds = array<i64: 1, 256>}, {transform_indices = @transform_3, window_bounds = array<i64: 4, 256>}]} {
    %c0 = arith.constant 0 : index
    %c0_0 = arith.constant 0 : index
    %0 = vector.load %arg1[%c0, %c0_0] : memref<4x128xbf16, #tpu.memory_space<vmem>>, vector<4x128xbf16>
    %c0_1 = arith.constant 0 : index
    %c0_2 = arith.constant 0 : index
    %1 = vector.load %arg2[%c0_1, %c0_2] : memref<128x256xbf16, #tpu.memory_space<vmem>>, vector<128x256xbf16>
    %cst = arith.constant dense<0.000000e+00> : vector<4x256xf32>
    %2 = tpu.matmul %0, %1, %cst {dimension_numbers = #tpu.dot_dimension_numbers<[1], [0], [0], [1], [0, 0, 1, 1], [], []>} : vector<4x128xbf16>, vector<128x256xbf16>, vector<4x256xf32> -> vector<4x256xf32>
    %c0_3 = arith.constant 0 : index
    %c0_4 = arith.constant 0 : index
    %3 = vector.load %arg3[%c0_3, %c0_4] : memref<1x256xf32, #tpu.memory_space<vmem>>, vector<1x256xf32>
    %4 = vector.broadcast %3 : vector<1x256xf32> to vector<4x256xf32>
    %5 = arith.addf %2, %4 : vector<4x256xf32>
    %c0_5 = arith.constant 0 : index
    %c0_6 = arith.constant 0 : index
    %6 = vector.load %arg4[%c0_5, %c0_6] : memref<4x256xf32, #tpu.memory_space<vmem>>, vector<4x256xf32>
    tpu.vector_store %arg4[%c0_5, %c0_6], %5 {strides = array<i32>} : memref<4x256xf32, #tpu.memory_space<vmem>>, vector<4x256xf32>,
    return
  }
  func.func @transform_0(%arg0: i32) -> (i32, i32) {
    %c0_i32 = arith.constant 0 : i32
    %c0_i32_0 = arith.constant 0 : i32
    return %arg0, %c0_i32 : i32, i32
  }
  func.func @transform_1(%arg0: i32) -> (i32, i32) {
    %c0_i32 = arith.constant 0 : i32
    %c0_i32_0 = arith.constant 0 : i32
    %c0_i32_1 = arith.constant 0 : i32
    return %c0_i32, %c0_i32_0 : i32, i32
  }
  func.func @transform_2(%arg0: i32) -> (i32, i32) {
    %c0_i32 = arith.constant 0 : i32
    %c0_i32_0 = arith.constant 0 : i32
    %c0_i32_1 = arith.constant 0 : i32
    return %c0_i32, %c0_i32_0 : i32, i32
  }
  func.func @transform_3(%arg0: i32) -> (i32, i32) {
    %c0_i32 = arith.constant 0 : i32
    %c0_i32_0 = arith.constant 0 : i32
    return %arg0, %c0_i32 : i32, i32
  }
}

</mosaic_0001>

<bundles_post_ra>
// kernel: patch_embedding.1
= control target key start
LH: loop header
LB: loop body
LE: loop exit
PB: predicated region body
PF: predicated region fallthrough
CT: control target
= control target key end

     0   :  { %vm146_vm0 = vcmask 1043456   ;;  %s359_s1 = inlined_call_operand.vmem [shape: bf16[128,256], index: 1, kind: input, shape index: {}]   ;;  %s360_s0 = inlined_call_operand.vmem [shape: bf16[4,128], index: 0, kind: input, shape index: {}]   ;;  %s361_s2 = inlined_call_operand.vmem [shape: f32[1,256], index: 2, kind: input, shape index: {}]   ;;  %s362_s3 = inlined_call_operand.vmem [shape: f32[4,256], index: 3, kind: output, shape index: {}]  }
   0x1   :  { %v212_v0 = vld [vmem:[%s359_s1 + $0x70] sm:$0xf]  ;;  %v233_v1 = vld [vmem:[%s359_s1 + $0x74] sm:$0xf0]  ;;  %v232_v2 = vld [vmem:[%s359_s1 + $0x74] sm:$0xf] }
   0x2   :  { %v213_v3 = vor.u32 %v233_v1, %v212_v0  ;;  %v214_v4 = vld [vmem:[%s359_s1 + $0x78] sm:$0xf0]  ;;  %v204_v5 = vld [vmem:[%s359_s1 + $0x60] sm:$0xf]  ;;  %v231_v6 = vld [vmem:[%s359_s1 + $0x64] sm:$0xf0] }
   0x3   :  { %v217_v7 = vor.u32 %v232_v2, %v214_v4  ;;  %v230_v8 = vld [vmem:[%s359_s1 + $0x64] sm:$0xf]  ;;  %v206_v9 = vld [vmem:[%s359_s1 + $0x68] sm:$0xf0]  ;;  %v205_v10 = vor.u32 %v231_v6, %v204_v5  ;;  %v196_v12 = vld [vmem:[%s359_s1 + $0x50] sm:$0xf] }
   0x4   :  { %117 = vmatpush.bf16.msra.mxu0 %v213_v3  ;;  %v209_v11 = vor.u32 %v230_v8, %v206_v9  ;;  %v229_v13 = vld [vmem:[%s359_s1 + $0x54] sm:$0xf0]  ;;  %v228_v14 = vld [vmem:[%s359_s1 + $0x54] sm:$0xf]  ;;  %v198_v15 = vld [vmem:[%s359_s1 + $0x58] sm:$0xf0] }
   0x5   :  { %130 = vmatpush.bf16.msra.mxu1 %v217_v7  ;;  %v197_v16 = vor.u32 %v229_v13, %v196_v12  ;;  %v201_v17 = vor.u32 %v228_v14, %v198_v15  ;;  %v188_v18 = vld [vmem:[%s359_s1 + $0x40] sm:$0xf]  ;;  %v227_v19 = vld [vmem:[%s359_s1 + $0x44] sm:$0xf0]  ;;  %v226_v20 = vld [vmem:[%s359_s1 + $0x44] sm:$0xf] }
   0x6   :  { %v190_v21 = vld [vmem:[%s359_s1 + $0x48] sm:$0xf0]  ;;  %v189_v22 = vor.u32 %v227_v19, %v188_v18  ;;  %v180_v24 = vld [vmem:[%s359_s1 + $0x30] sm:$0xf]  ;;  %v225_v25 = vld [vmem:[%s359_s1 + $0x34] sm:$0xf0] }
   0x7   :  { %v193_v23 = vor.u32 %v226_v20, %v190_v21  ;;  %v224_v26 = vld [vmem:[%s359_s1 + $0x34] sm:$0xf]  ;;  %v182_v27 = vld [vmem:[%s359_s1 + $0x38] sm:$0xf0]  ;;  %v181_v28 = vor.u32 %v225_v25, %v180_v24  ;;  %v172_v30 = vld [vmem:[%s359_s1 + $0x20] sm:$0xf] }
   0x8   :  { %118 = vmatpush.bf16.msra.mxu0 %v205_v10  ;;  %v185_v29 = vor.u32 %v224_v26, %v182_v27  ;;  %v223_v31 = vld [vmem:[%s359_s1 + $0x24] sm:$0xf0]  ;;  %v222_v32 = vld [vmem:[%s359_s1 + $0x24] sm:$0xf]  ;;  %v174_v33 = vld [vmem:[%s359_s1 + $0x28] sm:$0xf0] }
   0x9   :  { %131 = vmatpush.bf16.msra.mxu1 %v209_v11  ;;  %v173_v34 = vor.u32 %v223_v31, %v172_v30  ;;  %v177_v35 = vor.u32 %v222_v32, %v174_v33  ;;  %v164_v36 = vld [vmem:[%s359_s1 + $0x10] sm:$0xf]  ;;  %v221_v37 = vld [vmem:[%s359_s1 + $0x14] sm:$0xf0]  ;;  %v220_v38 = vld [vmem:[%s359_s1 + $0x14] sm:$0xf] }
   0xa   :  { %v166_v39 = vld [vmem:[%s359_s1 + $0x18] sm:$0xf0]  ;;  %v165_v40 = vor.u32 %v221_v37, %v164_v36  ;;  %v156_v42 = vld [vmem:[%s359_s1] sm:$0xf]  ;;  %v219_v43 = vld [vmem:[%s359_s1 + $0x4] sm:$0xf0] }
   0xb   :  { %v169_v41 = vor.u32 %v220_v38, %v166_v39  ;;  %v218_v44 = vld [vmem:[%s359_s1 + $0x4] sm:$0xf]  ;;  %v158_v45 = vld [vmem:[%s359_s1 + $0x8] sm:$0xf0]  ;;  %v157_v46 = vor.u32 %v219_v43, %v156_v42  ;;  %v14_v48 = vld [vmem:[%s360_s0] sm:$0x3] }
   0xc   :  { %119 = vmatpush.bf16.msra.mxu0 %v197_v16  ;;  %v161_v47 = vor.u32 %v218_v44, %v158_v45  ;;  %v31_v49 = vld [vmem:[%s361_s2] sm:$0x3] }
   0xd   :  { %132 = vmatpush.bf16.msra.mxu1 %v201_v17  ;;  %v34_v50 = vperm.slane %v31_v49, 1  ;;  %v33_v51 = vperm.slane %v31_v49, 0 }
  0x10   :  { %120 = vmatpush.bf16.msra.mxu0 %v189_v22 }
  0x11   :  { %133 = vmatpush.bf16.msra.mxu1 %v193_v23 }
  0x14   :  { %121 = vmatpush.bf16.msra.mxu0 %v181_v28 }
  0x15   :  { %134 = vmatpush.bf16.msra.mxu1 %v185_v29 }
  0x18   :  { %122 = vmatpush.bf16.msra.mxu0 %v173_v34 }
  0x19   :  { %135 = vmatpush.bf16.msra.mxu1 %v177_v35 }
  0x1c   :  { %123 = vmatpush.bf16.msra.mxu0 %v165_v40 }
  0x1d   :  { %136 = vmatpush.bf16.msra.mxu1 %v169_v41 }
  0x20   :  { %124 = vmatpush.bf16.msra.mxu0 %v157_v46 }
  0x21   :  { %137 = vmatpush.bf16.msra.mxu1 %v161_v47 }
  0x23   :  { %125 = vmatmul.bf16.vlgmr.msra.gmra.mxu0 %v14_v48 }
  0x24   :  { %138 = vmatmul.bf16.vlgmr.msra.gmra.mxu1 %v14_v48 }
  0xa0   :  { %v126_v52 = vpop.f32.mrf.mxu0 }
  0xa1   :  { %v139_v53 = vpop.f32.mrf.mxu1  ;;  %v127_v55 = vadd.f32 %v126_v52, %v33_v51 }
  0xa2   :  { %v140_v54 = vadd.f32 %v139_v53, %v34_v50 }
  0xa4   :  { %v145_v56 = vrot.slane %v140_v54, 4 }
  0xa6   :  { %v147_v57 = vsel %vm146_vm0, %v127_v55, %v145_v56 }
  0xa7   :  { %149 = vst [vmem:[%s362_s3] sm:$0xff] %v147_v57 }
  0xa8   :  { %v128_v58 = vpop.f32.mrf.mxu0 }
  0xa9   :  { %v141_v59 = vpop.f32.mrf.mxu1 }

</bundles_post_ra>
